<compile_context>
chip_gen: v7x
topology: tpu7x:2x2x1
jax: 0.10.0
libtpu: 0.0.40
codegen_flags: <defaults>
</compile_context>

<pallas_src>
import jax
import jax.numpy as jnp
from jax.experimental import pallas as pl
from jax.experimental.pallas import tpu as pltpu


def self_attention_kernel(x_ref, m_ref, r_ref, wvt_ref, bv_ref, gamma_ref, o_ref):
    # x_ref: (N, C) — one batch element (batch dim squeezed by the BlockSpec).
    x = x_ref[...]                                                     # [N, C] f32

    # Fused query/key projection: t_i = x_i @ (Wq^T Wk) + bq @ Wk.
    # Row-constant logit terms were dropped (exact under softmax over j).
    t = jnp.dot(x, m_ref[...], preferred_element_type=jnp.float32) + r_ref[...]     # [N, C]
    # Value projection with pre-transposed weight [Cin, Cout] (no in-kernel .T).
    v = jnp.dot(x, wvt_ref[...], preferred_element_type=jnp.float32) + bv_ref[...]  # [N, C]

    # logits[i, j] = t_i . x_j  (== q_i . k_j up to a row constant).
    # Contract last-vs-last axes directly — no transpose through the XLU.
    attn = jax.lax.dot_general(
        t, x,
        dimension_numbers=(((1,), (1,)), ((), ())),
        preferred_element_type=jnp.float32)                            # [N, N]

    # Numerically-stable softmax over j; reciprocal on the EUP, multiply on VPU.
    attn = attn - jnp.max(attn, axis=-1, keepdims=True)
    p = jnp.exp(attn)
    denom = jnp.sum(p, axis=-1, keepdims=True)
    p = p * pl.reciprocal(denom, approx=True)

    # out[i, c] = sum_j p[i, j] * v[j, c]  == torch.bmm(value, attn^T) per batch.
    out = jnp.dot(p, v, preferred_element_type=jnp.float32)            # [N, C]

    gamma = gamma_ref[0]                                               # scalar from SMEM
    o_ref[...] = gamma * out + x


def self_attention_pallas(x_nchw, wq, bq, wk, bk, wv, bv, gamma):
    B, C, H, W = x_nchw.shape
    N = H * W

    # NCHW -> [B, N, C]; position index = h*W + w matches torch .view(B, C, H*W).
    x_bnc = jnp.transpose(x_nchw, (0, 2, 3, 1)).reshape(B, N, C).astype(jnp.float32)

    # One-time wrapper-side weight prep (fusion + transposes are free here).
    m = jnp.dot(wq.T, wk)                          # [C, C]  = Wq^T @ Wk
    r = jnp.dot(bq, wk).reshape(1, C)              # [1, C]  = bq @ Wk
    wvt = wv.T                                     # [Cin, Cout]
    bv2 = bv.reshape(1, C)
    gamma_s = gamma.reshape(1).astype(jnp.float32)

    out_bnc = pl.pallas_call(
        self_attention_kernel,
        out_shape=jax.ShapeDtypeStruct((B, N, C), jnp.float32),
        grid_spec=pltpu.PrefetchScalarGridSpec(
            num_scalar_prefetch=0,
            grid=(B,),
            in_specs=[
                pl.BlockSpec((None, N, C), lambda b: (b, 0, 0)),       # x (batch squeezed)
                pl.BlockSpec((C, C), lambda b: (0, 0)),                # M = Wq^T Wk
                pl.BlockSpec((1, C), lambda b: (0, 0)),                # r = bq Wk
                pl.BlockSpec((C, C), lambda b: (0, 0)),                # Wv^T
                pl.BlockSpec((1, C), lambda b: (0, 0)),                # bv
                pl.BlockSpec(memory_space=pltpu.MemorySpace.SMEM),     # gamma (scalar)
            ],
            out_specs=pl.BlockSpec((None, N, C), lambda b: (b, 0, 0)),
        ),
        compiler_params=pltpu.CompilerParams(
            dimension_semantics=("parallel",)),                        # v7x: shard batch over TCs
    )(x_bnc, m, r, wvt, bv2, gamma_s)

    # [B, N, C] -> NCHW
    return jnp.transpose(out_bnc.reshape(B, H, W, C), (0, 3, 1, 2))


def self_attention_ref(x_nchw, wq, bq, wk, bk, wv, bv, gamma):
    """Pure-JAX reference mirroring the PyTorch forward exactly."""
    B, C, H, W = x_nchw.shape
    N = H * W
    x_flat = x_nchw.reshape(B, C, N)                               # [B, C, N]
    q = jnp.einsum('oc,bcn->bon', wq, x_flat) + bq[None, :, None]  # [B, Cq, N]
    k = jnp.einsum('oc,bcn->bon', wk, x_flat) + bk[None, :, None]
    v = jnp.einsum('oc,bcn->bon', wv, x_flat) + bv[None, :, None]  # [B, C, N]
    attn = jnp.einsum('bci,bcj->bij', q, k)                        # [B, N, N]
    attn = jax.nn.softmax(attn, axis=-1)
    out = jnp.einsum('bcj,bij->bci', v, attn)                      # [B, C, N]
    out = out.reshape(B, C, H, W)
    return gamma[0] * out + x_nchw


if __name__ == "__main__":
    key = jax.random.PRNGKey(0)
    B, C, H, W = 2, 32, 8, 8          # C must be >= 8 so that C // 8 >= 1
    Cq = C // 8

    k1, k2, k3, k4, k5, k6, k7 = jax.random.split(key, 7)
    x = jax.random.normal(k1, (B, C, H, W), dtype=jnp.float32)

    # Deterministic parameter init (conv 1x1 weights [Cout, Cin], biases [Cout]).
    wq = jax.random.normal(k2, (Cq, C), dtype=jnp.float32) * 0.1
    bq = jax.random.normal(k3, (Cq,), dtype=jnp.float32) * 0.01
    wk = jax.random.normal(k4, (Cq, C), dtype=jnp.float32) * 0.1
    bk = jax.random.normal(k5, (Cq,), dtype=jnp.float32) * 0.01
    wv = jax.random.normal(k6, (C, C), dtype=jnp.float32) * 0.1
    bv = jax.random.normal(k7, (C,), dtype=jnp.float32) * 0.01
    # PyTorch inits gamma = 0 (output == x); use a nonzero deterministic value
    # so the attention path is actually exercised numerically.
    gamma = jnp.array([0.5], dtype=jnp.float32)

    y = self_attention_pallas(x, wq, bq, wk, bk, wv, bv, gamma)
    y = jax.block_until_ready(y)

    y_ref = self_attention_ref(x, wq, bq, wk, bk, wv, bv, gamma)
    assert y.shape == (B, C, H, W)
    # Tolerance covers the approximate EUP reciprocal and the fused-logit path.
    assert jnp.allclose(y, y_ref, atol=2e-3, rtol=2e-3), \
        f"max abs err {jnp.max(jnp.abs(y - y_ref))}"

    print("KERNEL_OK")
</pallas_src>

<mosaic_0001>
module attributes {stable_mosaic.version = 11 : i64} {
  func.func @self_attention_kernel(%arg0: i32, %arg1: memref<1x64x32xf32, #tpu.memory_space<vmem>>, %arg2: memref<32x32xf32, #tpu.memory_space<vmem>>, %arg3: memref<1x32xf32, #tpu.memory_space<vmem>>, %arg4: memref<32x32xf32, #tpu.memory_space<vmem>>, %arg5: memref<1x32xf32, #tpu.memory_space<vmem>>, %arg6: memref<1xf32, #tpu.memory_space<smem>>, %arg7: memref<1x64x32xf32, #tpu.memory_space<vmem>>) attributes {dimension_semantics = [#tpu.dimension_semantics<parallel>], iteration_bounds = array<i64: 2>, scalar_prefetch = 0 : i64, scratch_operands = 0 : i64, tpu.core_type = #tpu.core_type<tc>, window_params = [{transform_indices = @transform_0, window_bounds = array<i64: 1, 64, 32>}, {pipeline_mode = #tpu.pipeline_mode<synchronous>, transform_indices = @transform_1, window_bounds = array<i64: 32, 32>}, {pipeline_mode = #tpu.pipeline_mode<synchronous>, transform_indices = @transform_2, window_bounds = array<i64: 1, 32>}, {pipeline_mode = #tpu.pipeline_mode<synchronous>, transform_indices = @transform_3, window_bounds = array<i64: 32, 32>}, {pipeline_mode = #tpu.pipeline_mode<synchronous>, transform_indices = @transform_4, window_bounds = array<i64: 1, 32>}, {transform_indices = @transform_5, window_bounds = array<i64: 1>}, {transform_indices = @transform_6, window_bounds = array<i64: 1, 64, 32>}]} {
    %c0 = arith.constant 0 : index
    %c0_0 = arith.constant 0 : index
    %c0_1 = arith.constant 0 : index
    %0 = vector.load %arg1[%c0, %c0_0, %c0_1] : memref<1x64x32xf32, #tpu.memory_space<vmem>>, vector<1x64x32xf32>
    %1 = vector.shape_cast %0 : vector<1x64x32xf32> to vector<64x32xf32>
    %c0_2 = arith.constant 0 : index
    %c0_3 = arith.constant 0 : index
    %2 = vector.load %arg2[%c0_2, %c0_3] : memref<32x32xf32, #tpu.memory_space<vmem>>, vector<32x32xf32>
    %cst = arith.constant dense<0.000000e+00> : vector<64x32xf32>
    %3 = tpu.matmul %1, %2, %cst {dimension_numbers = #tpu.dot_dimension_numbers<[1], [0], [0], [1], [0, 0, 1, 1], [], []>} : vector<64x32xf32>, vector<32x32xf32>, vector<64x32xf32> -> vector<64x32xf32>
    %c0_4 = arith.constant 0 : index
    %c0_5 = arith.constant 0 : index
    %4 = vector.load %arg3[%c0_4, %c0_5] : memref<1x32xf32, #tpu.memory_space<vmem>>, vector<1x32xf32>
    %5 = vector.broadcast %4 : vector<1x32xf32> to vector<64x32xf32>
    %6 = arith.addf %3, %5 : vector<64x32xf32>
    %c0_6 = arith.constant 0 : index
    %c0_7 = arith.constant 0 : index
    %7 = vector.load %arg4[%c0_6, %c0_7] : memref<32x32xf32, #tpu.memory_space<vmem>>, vector<32x32xf32>
    %cst_8 = arith.constant dense<0.000000e+00> : vector<64x32xf32>
    %8 = tpu.matmul %1, %7, %cst_8 {dimension_numbers = #tpu.dot_dimension_numbers<[1], [0], [0], [1], [0, 0, 1, 1], [], []>} : vector<64x32xf32>, vector<32x32xf32>, vector<64x32xf32> -> vector<64x32xf32>
    %c0_9 = arith.constant 0 : index
    %c0_10 = arith.constant 0 : index
    %9 = vector.load %arg5[%c0_9, %c0_10] : memref<1x32xf32, #tpu.memory_space<vmem>>, vector<1x32xf32>
    %10 = vector.broadcast %9 : vector<1x32xf32> to vector<64x32xf32>
    %11 = arith.addf %8, %10 : vector<64x32xf32>
    %cst_11 = arith.constant dense<0.000000e+00> : vector<64x64xf32>
    %12 = tpu.matmul %6, %1, %cst_11 {dimension_numbers = #tpu.dot_dimension_numbers<[1], [1], [0], [0], [0, 0, 1, 0], [], []>} : vector<64x32xf32>, vector<64x32xf32>, vector<64x64xf32> -> vector<64x64xf32>
    %cst_12 = arith.constant dense<0xFF800000> : vector<64xf32>
    %13 = vector.multi_reduction <maximumf>, %12, %cst_12 [1] : vector<64x64xf32> to vector<64xf32>
    %14 = vector.shape_cast %13 : vector<64xf32> to vector<64x1xf32>
    %15 = vector.broadcast %14 : vector<64x1xf32> to vector<64x64xf32>
    %16 = arith.subf %12, %15 : vector<64x64xf32>
    %17 = math.exp %16 : vector<64x64xf32>
    %cst_13 = arith.constant dense<0.000000e+00> : vector<64xf32>
    %18 = vector.multi_reduction <add>, %17, %cst_13 [1] : vector<64x64xf32> to vector<64xf32>
    %19 = vector.shape_cast %18 : vector<64xf32> to vector<64x1xf32>
    %20 = tpu.reciprocal %19 {approx = true} : vector<64x1xf32> -> vector<64x1xf32>
    %21 = vector.broadcast %20 : vector<64x1xf32> to vector<64x64xf32>
    %22 = arith.mulf %17, %21 : vector<64x64xf32>
    %cst_14 = arith.constant dense<0.000000e+00> : vector<64x32xf32>
    %23 = tpu.matmul %22, %11, %cst_14 {dimension_numbers = #tpu.dot_dimension_numbers<[1], [0], [0], [1], [0, 0, 1, 1], [], []>} : vector<64x64xf32>, vector<64x32xf32>, vector<64x32xf32> -> vector<64x32xf32>
    %c0_15 = arith.constant 0 : index
    %24 = memref.load %arg6[%c0_15] : memref<1xf32, #tpu.memory_space<smem>>
    %25 = vector.broadcast %24 : f32 to vector<64x32xf32>
    %26 = arith.mulf %25, %23 : vector<64x32xf32>
    %27 = arith.addf %26, %1 : vector<64x32xf32>
    %c0_16 = arith.constant 0 : index
    %c0_17 = arith.constant 0 : index
    %c0_18 = arith.constant 0 : index
    %28 = vector.load %arg7[%c0_16, %c0_17, %c0_18] : memref<1x64x32xf32, #tpu.memory_space<vmem>>, vector<1x64x32xf32>
    %29 = vector.shape_cast %28 : vector<1x64x32xf32> to vector<64x32xf32>
    %30 = vector.shape_cast %27 : vector<64x32xf32> to vector<1x64x32xf32>
    tpu.vector_store %arg7[%c0_16, %c0_17, %c0_18], %30 {strides = array<i32>} : memref<1x64x32xf32, #tpu.memory_space<vmem>>, vector<1x64x32xf32>,
    return
  }
  func.func @transform_0(%arg0: i32) -> (i32, i32, i32) {
    %c0_i32 = arith.constant 0 : i32
    %c0_i32_0 = arith.constant 0 : i32
    %c0_i32_1 = arith.constant 0 : i32
    return %arg0, %c0_i32, %c0_i32_0 : i32, i32, i32
  }
  func.func @transform_1(%arg0: i32) -> (i32, i32) {
    %c0_i32 = arith.constant 0 : i32
    %c0_i32_0 = arith.constant 0 : i32
    %c0_i32_1 = arith.constant 0 : i32
    return %c0_i32, %c0_i32_0 : i32, i32
  }
  func.func @transform_2(%arg0: i32) -> (i32, i32) {
    %c0_i32 = arith.constant 0 : i32
    %c0_i32_0 = arith.constant 0 : i32
    %c0_i32_1 = arith.constant 0 : i32
    return %c0_i32, %c0_i32_0 : i32, i32
  }
  func.func @transform_3(%arg0: i32) -> (i32, i32) {
    %c0_i32 = arith.constant 0 : i32
    %c0_i32_0 = arith.constant 0 : i32
    %c0_i32_1 = arith.constant 0 : i32
    return %c0_i32, %c0_i32_0 : i32, i32
  }
  func.func @transform_4(%arg0: i32) -> (i32, i32) {
    %c0_i32 = arith.constant 0 : i32
    %c0_i32_0 = arith.constant 0 : i32
    %c0_i32_1 = arith.constant 0 : i32
    return %c0_i32, %c0_i32_0 : i32, i32
  }
  func.func @transform_5(%arg0: i32) -> i32 {
    %c0_i32 = arith.constant 0 : i32
    %c0_i32_0 = arith.constant 0 : i32
    return %c0_i32 : i32
  }
  func.func @transform_6(%arg0: i32) -> (i32, i32, i32) {
    %c0_i32 = arith.constant 0 : i32
    %c0_i32_0 = arith.constant 0 : i32
    %c0_i32_1 = arith.constant 0 : i32
    return %arg0, %c0_i32, %c0_i32_0 : i32, i32, i32
  }
}

</mosaic_0001>

<bundles_post_ra>
// kernel: tpu_custom_call.1
= control target key start
LH: loop header
LB: loop body
LE: loop exit
PB: predicated region body
PF: predicated region fallthrough
CT: control target
= control target key end

     0   :  { %s1295_s23 = smov 0   ;;  %s1485_s0 = inlined_call_operand.vmem [shape: f32[2,64,32], index: 0, kind: input, shape index: {}]   ;;  %s1486_s1 = inlined_call_operand.vmem [shape: f32[32,32], index: 1, kind: input, shape index: {}]   ;;  %s1487_s2 = inlined_call_operand.vmem [shape: f32[1,32], index: 2, kind: input, shape index: {}]   ;;  %s1488_s3 = inlined_call_operand.vmem [shape: f32[32,32], index: 3, kind: input, shape index: {}]   ;;  %s1489_s4 = inlined_call_operand.vmem [shape: f32[1,32], index: 4, kind: input, shape index: {}]   ;;  %s1490_s5 = inlined_call_operand.<no memory space> [shape: f32[1], index: 5, kind: input, shape index: {}]   ;;  %s1491_s6 = inlined_call_operand.vmem [shape: f32[2,64,32], index: 6, kind: output, shape index: {}]  }
   0x1   :  { %11 = sst [smem:[#allocation2]] %s1490_s5 }
   0x2 LB: > { %s946_s24 = sadd.s32 4294967295, %s1255_s23   ;;  %p950_p0 = scmp.ge.s32.totalorder %s1255_s23, 1  ;;  %s1255_s23 = sphi %s1295_s23, %s17_s23  }
   0x3   : > { %p213_p1 = scmp.lt.s32.totalorder %s1255_s23, 3 }
   0x5   : > { %p214_p2 = pnand %p950_p0, %p213_p1 }
   0x6   : > { %v261_v0 = vld [vmem:[%s1486_s1] sm:$0xff] (!%p214_p2)  ;;  %v262_v1 = vld [vmem:[%s1486_s1 + $0x8] sm:$0xff] (!%p214_p2)  ;;  %v263_v2 = vld [vmem:[%s1486_s1 + $0x10] sm:$0xff] (!%p214_p2)  ;;  %p243_p3 = scmp.lt.s32.totalorder (!%p214_p2), %s946_s24, 1  ;;  %vm272_vm0 = vcmask (!%p214_p2), 261120   ;;  %vm647_vm2 = vcmask (!%p214_p2), 523264  }
   0x7   : > { %217 = sbr.rel (%p214_p2) target bundleno = 996 (0x3e4), region = 44  ;;  %v1153_v3 = vpack.c.bf16 (!%p214_p2), %v262_v1, %v261_v0  ;;  %v264_v4 = vld [vmem:[%s1486_s1 + $0x18] sm:$0xff] (!%p214_p2)  ;;  %vm1329_vm1 = vmpackc.low (!%p214_p2), %vm272_vm0, %vm272_vm0  ;;  %v955_v19 = vld [vmem:[%s1487_s2] ss:$0 sm:$0xff] (!%p214_p2)  ;;  %s865_s26 = sld [smem:[#allocation2]] (!%p214_p2) }
   0x8   : > { %v1157_v5 = vpack.c.bf16 (!%p214_p2), %v264_v4, %v263_v2  ;;  %v402_v36 = vld [vmem:[%s1488_s3] sm:$0xff] (!%p214_p2)  ;;  %v403_v37 = vld [vmem:[%s1488_s3 + $0x8] sm:$0xff] (!%p214_p2)  ;;  %v404_v38 = vld [vmem:[%s1488_s3 + $0x10] sm:$0xff] (!%p214_p2) }
   0x9   : > { %1154 = vmatprep.subr.bf16.mxu0 (!%p214_p2), %v1153_v3  ;;  %v1161_v39 = vpack.c.bf16 (!%p214_p2), %v403_v37, %v402_v36  ;;  %v405_v40 = vld [vmem:[%s1488_s3 + $0x18] sm:$0xff] (!%p214_p2)  ;;  %v1435_v58 = vld [vmem:[%s1489_s4] ss:$0 sm:$0xff] (!%p214_p2) }
   0xa   : > { %1156 = vmatpush3.bf16.msra.mxu0 (!%p214_p2), %v1153_v3  ;;  %v1165_v41 = vpack.c.bf16 (!%p214_p2), %v405_v40, %v404_v38 }
   0xb   : > { %1158 = vmatprep.subr.bf16.mxu0 (!%p214_p2), %v1157_v5  ;;  %1162 = vmatprep.subr.bf16.mxu1 (!%p214_p2), %v1161_v39 }
   0xc   : > { %1164 = vmatpush3.bf16.msra.mxu1 (!%p214_p2), %v1161_v39 }
   0xd   : > { %1166 = vmatprep.subr.bf16.mxu1 (!%p214_p2), %v1165_v41 }
   0xe   : > { %s1495_s24 = smov (!%p243_p3, %s946_s24), 1  ;;  %1160 = vmatpush3.bf16.msra.mxu0 %v1157_v5 }
   0xf   : > { %s999_s8 = sshll.u32 %s1495_s24, 6 }
  0x10   : > { %s247_s11 = scalar_lea.vmem %s1485_s0, %s999_s8  ;;  %1168 = vmatpush3.bf16.msra.mxu1 %v1165_v41  ;;  %s252_s28 = scalar_lea.vmem %s1491_s6, %s999_s8 }
  0x11   : > { %v1323_v6 = vld [vmem:[%s247_s11] sm:$0xff]  ;;  %v1325_v7 = vld [vmem:[%s247_s11 + $0x8] sm:$0xff]  ;;  %v1339_v10 = vld [vmem:[%s247_s11 + $0x10] sm:$0xff] }
  0x12   : > { %1065 = vmatprep.mubr.msk.f32.mxu0 %vm272_vm0, %v1323_v6  ;;  %v1169_v9 = vpack.c.bf16 %v1325_v7, %v1323_v6  ;;  %1085 = vmatprep.mubr.msk.f32.mxu1 %vm272_vm0, %v1323_v6  ;;  %v1347_v11 = vld [vmem:[%s247_s11 + $0x18] sm:$0xff]  ;;  %v1349_v12 = vld [vmem:[%s247_s11 + $0x20] sm:$0xff]  ;;  %v1357_v14 = vld [vmem:[%s247_s11 + $0x28] sm:$0xff] }
  0x13   : > { %1066 = vmatmul.mubr.msk.f32.vlgmr.msra.gmra.mrb[0].mxu0 %vm272_vm0, %v1325_v7  ;;  %v1175_v13 = vpack.c.bf16 %v1347_v11, %v1339_v10  ;;  %v1359_v15 = vld [vmem:[%s247_s11 + $0x30] sm:$0xff]  ;;  %v1369_v16 = vld [vmem:[%s247_s11 + $0x38] sm:$0xff]  ;;  %v1181_v17 = vpack.c.bf16 %v1357_v14, %v1349_v12  ;;  %1086 = vmatmul.mubr.msk.f32.vlgmr.msra.gmra.mrb[0].mxu1 %vm272_vm0, %v1325_v7 }
  0x14   : > { %1171 = vmatprep.subr.msk.bf16.mxu0 %vm1329_vm1, %v1169_v9  ;;  %1068 = vmatprep.mubr.msk.f32.mxu0 %vm272_vm0, %v1339_v10  ;;  %v1187_v18 = vpack.c.bf16 %v1369_v16, %v1359_v15 }
  0x15   : > { %1088 = vmatprep.mubr.msk.f32.mxu1 %vm272_vm0, %v1339_v10 }
  0x17   : > { %1069 = vmatmul.mubr.msk.f32.gmra.mrb[2].mxu0 %vm272_vm0, %v1347_v11  ;;  %1089 = vmatmul.mubr.msk.f32.gmra.mrb[2].mxu1 %vm272_vm0, %v1347_v11 }
  0x18   : > { %1071 = vmatprep.mubr.msk.f32.mxu0 %vm272_vm0, %v1349_v12  ;;  %1174 = vmatpush3.bf16.xpose.msk.msra.mxu0 %vm1329_vm1, %v1169_v9 }
  0x19   : > { %1177 = vmatprep.subr.msk.bf16.mxu0 %vm1329_vm1, %v1175_v13  ;;  %1091 = vmatprep.mubr.msk.f32.mxu1 %vm272_vm0, %v1349_v12 }
  0x1b   : > { %1072 = vmatmul.mubr.msk.f32.gmra.mrb[4].mxu0 %vm272_vm0, %v1357_v14  ;;  %1092 = vmatmul.mubr.msk.f32.gmra.mrb[4].mxu1 %vm272_vm0, %v1357_v14 }
  0x1c   : > { %1074 = vmatprep.mubr.msk.f32.mxu0 %vm272_vm0, %v1359_v15  ;;  %1094 = vmatprep.mubr.msk.f32.mxu1 %vm272_vm0, %v1359_v15 }
  0x1f   : > { %1075 = vmatmul.mubr.msk.f32.gmra.mrb[6].mxu0 %vm272_vm0, %v1369_v16  ;;  %1095 = vmatmul.mubr.msk.f32.gmra.mrb[6].mxu1 %vm272_vm0, %v1369_v16 }
  0x20   : > { %1180 = vmatpush3.bf16.xpose.msk.msra.mxu0 %vm1329_vm1, %v1175_v13 }
  0x21   : > { %1183 = vmatprep.subr.msk.bf16.mxu0 %vm1329_vm1, %v1181_v17 }
  0x28   : > { %1186 = vmatpush3.bf16.xpose.msk.msra.mxu0 %vm1329_vm1, %v1181_v17 }
  0x29   : > { %1189 = vmatprep.subr.msk.bf16.mxu0 %vm1329_vm1, %v1187_v18 }
  0x30   : > { %1192 = vmatpush3.bf16.xpose.msk.msra.mxu0 %vm1329_vm1, %v1187_v18 }
  0xe6   : > { %v1067_v20 = vpop.f32.mrb[0].mxu0  ;;  %v1087_v59 = vpop.f32.mrb[0].mxu1 }
  0xe7   : > { %v363_v21 = vpop.f32.mrb[1].mxu0  ;;  %v369_v23 = vadd.f32 %v1067_v20, %v955_v19  ;;  %v485_v60 = vadd.f32 %v1087_v59, %v1435_v58  ;;  %v479_v61 = vpop.f32.mrb[1].mxu1 }
  0xe8   : > { %v364_v22 = vadd.f32 %v955_v19, %v363_v21  ;;  %v480_v62 = vadd.f32 %v1435_v58, %v479_v61 }
  0xea   : > { %v1070_v24 = vpop.f32.mrb[2].mxu0  ;;  %1113 = vmatprep.mubr.msk.f32.mxu0 %vm272_vm0, %v364_v22  ;;  %v1193_v63 = vpack.c.bf16 %v485_v60, %v480_v62  ;;  %v1090_v0 = vpop.f32.mrb[2].mxu1 }
  0xeb   : > { %v373_v25 = vpop.f32.mrb[3].mxu0  ;;  %1114 = vmatmul.mubr.msk.f32.vlgmr.msra.gmra.mrb[8].mxu0 %vm272_vm0, %v369_v23  ;;  %v379_v27 = vadd.f32 %v1070_v24, %v955_v19  ;;  %v495_v1 = vadd.f32 %v1090_v0, %v1435_v58  ;;  %v489_v2 = vpop.f32.mrb[3].mxu1 }
  0xec   : > { %v374_v26 = vadd.f32 %v955_v19, %v373_v25  ;;  %v490_v3 = vadd.f32 %v1435_v58, %v489_v2  ;;  %1194 = vmatprep.subr.bf16.mxu1 %v1193_v63 }
  0xed   : > { %1196 = vmatpush3.bf16.msra.mxu1 %v1193_v63 }
  0xee   : > { %v1073_v28 = vpop.f32.mrb[4].mxu0  ;;  %1116 = vmatprep.mubr.msk.f32.mxu0 %vm272_vm0, %v374_v26  ;;  %v1197_v4 = vpack.c.bf16 %v495_v1, %v490_v3 }
  0xef   : > { %v389_v29 = vadd.f32 %v1073_v28, %v955_v19  ;;  %v383_v30 = vpop.f32.mrb[5].mxu0  ;;  %1117 = vmatmul.mubr.msk.f32.gmra.mrb[10].mxu0 %vm272_vm0, %v379_v27 }
  0xf0   : > { %v384_v31 = vadd.f32 %v955_v19, %v383_v30  ;;  %1198 = vmatprep.subr.bf16.mxu1 %v1197_v4 }
  0xf1   : > { %1200 = vmatpush3.bf16.msra.mxu1 %v1197_v4 }
  0xf2   : > { %v1076_v32 = vpop.f32.mrb[6].mxu0  ;;  %1119 = vmatprep.mubr.msk.f32.mxu0 %vm272_vm0, %v384_v31 }
  0xf3   : > { %v399_v33 = vadd.f32 %v1076_v32, %v955_v19  ;;  %v393_v34 = vpop.f32.mrb[7].mxu0  ;;  %1120 = vmatmul.mubr.msk.f32.gmra.mrb[12].mxu0 %vm272_vm0, %v389_v29 }
  0xf4   : > { %v394_v35 = vadd.f32 %v955_v19, %v393_v34 }
  0xf6   : > { %1122 = vmatprep.mubr.msk.f32.mxu0 %vm272_vm0, %v394_v35 }
  0xf7   : > { %1123 = vmatmul.mubr.msk.f32.gmra.mrb[14].mxu0 %vm272_vm0, %v399_v33 }
 0x1be   : > { %v1115_v42 = vpop.f32.mrb[8].mxu0 }
 0x1bf   : > { %v608_v43 = vpop.f32.mrb[9].mxu0  ;;  %v651_v47 = vsel %vm647_vm2, %v1115_v42, -inf }
 0x1c0   : > { %v648_v44 = vsel %vm647_vm2, %v608_v43, -inf }
 0x1c1   : > { %649 = vmax.xlane.f32.xlu0 %v648_v44 }
 0x1c2   : > { %v1118_v45 = vpop.f32.mrb[10].mxu0 }
 0x1c3   : > { %v618_v46 = vpop.f32.mrb[11].mxu0  ;;  %v657_v51 = vsel %vm647_vm2, %v1118_v45, -inf }
 0x1c4   : > { %v654_v48 = vsel %vm647_vm2, %v618_v46, -inf }
 0x1c5   : > { %652 = vmax.xlane.f32.xlu0 %v651_v47  ;;  %655 = vmax.xlane.f32.xlu1 %v654_v48 }
 0x1c6   : > { %v1121_v49 = vpop.f32.mrb[12].mxu0 }
 0x1c7   : > { %v628_v50 = vpop.f32.mrb[13].mxu0  ;;  %v663_v55 = vsel %vm647_vm2, %v1121_v49, -inf }
 0x1c8   : > { %v660_v52 = vsel %vm647_vm2, %v628_v50, -inf }
 0x1c9   : > { %658 = vmax.xlane.f32.xlu1 %v657_v51  ;;  %661 = vmax.xlane.f32.xlu0 %v660_v52  ;;  %v1093_v52 = vpop.f32.mrb[4].mxu1 }
 0x1ca   : > { %v1124_v53 = vpop.f32.mrb[14].mxu0 }
 0x1cb   : > { %v638_v54 = vpop.f32.mrb[15].mxu0  ;;  %v669_v57 = vsel %vm647_vm2, %v1124_v53, -inf }
 0x1cc   : > { %v666_v56 = vsel %vm647_vm2, %v638_v54, -inf }
 0x1cd   : > { %664 = vmax.xlane.f32.xlu1 %v663_v55  ;;  %667 = vmax.xlane.f32.xlu0 %v666_v56  ;;  %v499_v55 = vpop.f32.mrb[5].mxu1 }
 0x1ce   : > { %v500_v56 = vadd.f32 %v1435_v58, %v499_v55  ;;  %v1096_v59 = vpop.f32.mrb[6].mxu1 }
 0x1cf   : > { %v509_v60 = vpop.f32.mrb[7].mxu1  ;;  %v515_v61 = vadd.f32 %v1096_v59, %v1435_v58 }
 0x1d0   : > { %v510_v62 = vadd.f32 %v1435_v58, %v509_v60 }
 0x1d1   : > { %670 = vmax.xlane.f32.xlu1 %v669_v57 }
 0x1d2   : > { %v1205_v63 = vpack.c.bf16 %v515_v61, %v510_v62 }
 0x24e   : > { %v650_v5 = vpop.xlane.xlu0 %649 }
 0x24f   : > { %v672_v8 = vsub.f32 %v608_v43, %v650_v5 }
 0x251   : > { %v680_v9 = vmul.f32 1.442695, %v672_v8 }
 0x252   : > { %v653_v13 = vpop.xlane.xlu0 %652  ;;  %v656_v17 = vpop.xlane.xlu1 %655 }
 0x253   : > { %1217 = vpow2.f32 %v680_v9  ;;  %v673_v18 = vsub.f32 %v1115_v42, %v653_v13  ;;  %v674_v19 = vsub.f32 %v618_v46, %v656_v17 }
 0x255   : > { %v682_v20 = vmul.f32 1.442695, %v673_v18  ;;  %v684_v21 = vmul.f32 1.442695, %v674_v19 }
 0x256   : > { %v659_v22 = vpop.xlane.xlu1 %658  ;;  %v662_v23 = vpop.xlane.xlu0 %661 }
 0x257   : > { %1219 = vpow2.f32 %v682_v20  ;;  %v675_v24 = vsub.f32 %v1118_v45, %v659_v22  ;;  %v676_v25 = vsub.f32 %v628_v50, %v662_v23 }
 0x258   : > { %1221 = vpow2.f32 %v684_v21 }
 0x259   : > { %v686_v26 = vmul.f32 1.442695, %v675_v24  ;;  %v688_v27 = vmul.f32 1.442695, %v676_v25 }
 0x25a   : > { %v665_v28 = vpop.xlane.xlu1 %664  ;;  %v668_v29 = vpop.xlane.xlu0 %667 }
 0x25b   : > { %1223 = vpow2.f32 %v686_v26  ;;  %v677_v30 = vsub.f32 %v1121_v49, %v665_v28  ;;  %v678_v31 = vsub.f32 %v638_v54, %v668_v29  ;;  %v505_v54 = vadd.f32 %v1093_v52, %v1435_v58 }
 0x25c   : > { %1225 = vpow2.f32 %v688_v27 }
 0x25d   : > { %v1218_v32 = vpop.eup %1217  ;;  %v690_v33 = vmul.f32 1.442695, %v677_v30  ;;  %v692_v34 = vmul.f32 1.442695, %v678_v31  ;;  %v1201_v57 = vpack.c.bf16 %v505_v54, %v500_v56  ;;  %v866_v31 = vstv %s865_s26 }
 0x25e   : > { %v671_v35 = vpop.xlane.xlu1 %670  ;;  %v696_v36 = vsel %vm647_vm2, %v1218_v32, 0.0 }
 0x25f   : > { %1227 = vpow2.f32 %v690_v33  ;;  %v679_v37 = vsub.f32 %v1124_v53, %v671_v35  ;;  %697 = vadd.xlane.f32.xlu0 %v696_v36  ;;  %1202 = vmatprep.subr.bf16.mxu1 %v1201_v57 }
 0x260   : > { %1229 = vpow2.f32 %v692_v34  ;;  %1204 = vmatpush3.bf16.msra.mxu1 %v1201_v57 }
 0x261   : > { %v1220_v38 = vpop.eup %1219  ;;  %v694_v39 = vmul.f32 1.442695, %v679_v37  ;;  %1206 = vmatprep.subr.bf16.mxu1 %v1205_v63 }
 0x262   : > { %v1222_v40 = vpop.eup %1221  ;;  %v699_v41 = vsel %vm647_vm2, %v1220_v38, 0.0 }
 0x263   : > { %1231 = vpow2.f32 %v694_v39  ;;  %700 = vadd.xlane.f32.xlu1 %v699_v41  ;;  %v702_v42 = vsel %vm647_vm2, %v1222_v40, 0.0 }
 0x264   : > { %703 = vadd.xlane.f32.xlu0 %v702_v42  ;;  %1208 = vmatpush3.bf16.msra.mxu1 %v1205_v63 }
 0x265   : > { %v1224_v43 = vpop.eup %1223 }
 0x266   : > { %v1226_v44 = vpop.eup %1225  ;;  %v705_v45 = vsel %vm647_vm2, %v1224_v43, 0.0 }
 0x267   : > { %706 = vadd.xlane.f32.xlu1 %v705_v45  ;;  %v708_v46 = vsel %vm647_vm2, %v1226_v44, 0.0 }
 0x268   : > { %709 = vadd.xlane.f32.xlu0 %v708_v46 }
 0x269   : > { %v1228_v47 = vpop.eup %1227 }
 0x26a   : > { %v1230_v48 = vpop.eup %1229  ;;  %v711_v49 = vsel %vm647_vm2, %v1228_v47, 0.0 }
 0x26b   : > { %712 = vadd.xlane.f32.xlu1 %v711_v49  ;;  %v714_v50 = vsel %vm647_vm2, %v1230_v48, 0.0 }
 0x26c   : > { %715 = vadd.xlane.f32.xlu0 %v714_v50 }
 0x26d   : > { %v1232_v51 = vpop.eup %1231 }
 0x26e   : > { %v717_v53 = vsel %vm647_vm2, %v1232_v51, 0.0 }
 0x26f   : > { %718 = vadd.xlane.f32.xlu1 %v717_v53 }
 0x2ec   : > { %v698_v0 = vpop.xlane.xlu0 %697 }
 0x2ed   : > { %1233 = vrcp.f32 %v698_v0 }
 0x2f0   : > { %v701_v1 = vpop.xlane.xlu1 %700 }
 0x2f1   : > { %1235 = vrcp.f32 %v701_v1  ;;  %v704_v2 = vpop.xlane.xlu0 %703 }
 0x2f2   : > { %1237 = vrcp.f32 %v704_v2 }
 0x2f4   : > { %v707_v3 = vpop.xlane.xlu1 %706 }
 0x2f5   : > { %1239 = vrcp.f32 %v707_v3  ;;  %v710_v4 = vpop.xlane.xlu0 %709 }
 0x2f6   : > { %1241 = vrcp.f32 %v710_v4 }
 0x2f7   : > { %v1234_v5 = vpop.eup %1233 }
 0x2f8   : > { %v713_v8 = vpop.xlane.xlu1 %712  ;;  %v728_v9 = vmul.f32 %v1234_v5, %v1218_v32 }
 0x2f9   : > { %1243 = vrcp.f32 %v713_v8  ;;  %v716_v13 = vpop.xlane.xlu0 %715 }
 0x2fa   : > { %1245 = vrcp.f32 %v716_v13  ;;  %1141 = vmatprep.mubr.msk.f32.mxu1 %vm647_vm2, %v728_v9 }
 0x2fb   : > { %v1236_v58 = vpop.eup %1235 }
 0x2fc   : > { %v1238_v17 = vpop.eup %1237  ;;  %v729_v18 = vmul.f32 %v1236_v58, %v1220_v38  ;;  %v719_v19 = vpop.xlane.xlu1 %718 }
 0x2fd   : > { %1247 = vrcp.f32 %v719_v19  ;;  %v730_v20 = vmul.f32 %v1238_v17, %v1222_v40 }
 0x2fe   : > { %1142 = vmatmul.mubr.msk.f32.vlgmr.msra.gmra.mrb[8].mxu1 %vm647_vm2, %v729_v18 }
 0x2ff   : > { %v1240_v21 = vpop.eup %1239  ;;  %1144 = vmatprep.mubr.msk.f32.mxu1 %vm647_vm2, %v730_v20 }
 0x300   : > { %v1242_v22 = vpop.eup %1241  ;;  %v731_v23 = vmul.f32 %v1240_v21, %v1224_v43 }
 0x301   : > { %v732_v24 = vmul.f32 %v1242_v22, %v1226_v44 }
 0x302   : > { %1145 = vmatmul.mubr.msk.f32.gmra.mrb[10].mxu1 %vm647_vm2, %v731_v23 }
 0x303   : > { %v1244_v25 = vpop.eup %1243  ;;  %1147 = vmatprep.mubr.msk.f32.mxu1 %vm647_vm2, %v732_v24 }
 0x304   : > { %v1246_v26 = vpop.eup %1245  ;;  %v733_v27 = vmul.f32 %v1244_v25, %v1228_v47 }
 0x305   : > { %v734_v28 = vmul.f32 %v1246_v26, %v1230_v48 }
 0x306   : > { %1148 = vmatmul.mubr.msk.f32.gmra.mrb[12].mxu1 %vm647_vm2, %v733_v27 }
 0x307   : > { %v1248_v29 = vpop.eup %1247  ;;  %1150 = vmatprep.mubr.msk.f32.mxu1 %vm647_vm2, %v734_v28 }
 0x308   : > { %v735_v30 = vmul.f32 %v1248_v29, %v1232_v51 }
 0x30a   : > { %1151 = vmatmul.mubr.msk.f32.gmra.mrb[14].mxu1 %vm647_vm2, %v735_v30 }
 0x3d1   : > { %v1143_v32 = vpop.f32.mrb[8].mxu1 }
 0x3d2   : > { %v868_v33 = vmul.f32 %v1143_v32, %v866_v31  ;;  %v826_v34 = vpop.f32.mrb[9].mxu1 }
 0x3d3   : > { %v867_v35 = vmul.f32 %v866_v31, %v826_v34 }
 0x3d4   : > { %v876_v36 = vadd.f32 %v868_v33, %v1325_v7 }
 0x3d5   : > { %v875_v37 = vadd.f32 %v867_v35, %v1323_v6  ;;  %v1146_v38 = vpop.f32.mrb[10].mxu1 }
 0x3d6   : > { %884 = vst.msk [vmem:[%s252_s28 + $0x8] sm:$0xff] %vm272_vm0, %v876_v36  ;;  %v870_v39 = vmul.f32 %v1146_v38, %v866_v31  ;;  %v836_v40 = vpop.f32.mrb[11].mxu1 }
 0x3d7   : > { %883 = vst.msk [vmem:[%s252_s28] sm:$0xff] %vm272_vm0, %v875_v37  ;;  %v869_v41 = vmul.f32 %v866_v31, %v836_v40 }
 0x3d8   : > { %v878_v42 = vadd.f32 %v870_v39, %v1347_v11 }
 0x3d9   : > { %v877_v43 = vadd.f32 %v869_v41, %v1339_v10  ;;  %v1149_v44 = vpop.f32.mrb[12].mxu1 }
 0x3da   : > { %886 = vst.msk [vmem:[%s252_s28 + $0x18] sm:$0xff] %vm272_vm0, %v878_v42  ;;  %v872_v45 = vmul.f32 %v1149_v44, %v866_v31  ;;  %v846_v46 = vpop.f32.mrb[13].mxu1 }
 0x3db   : > { %885 = vst.msk [vmem:[%s252_s28 + $0x10] sm:$0xff] %vm272_vm0, %v877_v43  ;;  %v871_v6 = vmul.f32 %v866_v31, %v846_v46 }
 0x3dc   : > { %v880_v7 = vadd.f32 %v872_v45, %v1357_v14 }
 0x3dd   : > { %v879_v47 = vadd.f32 %v871_v6, %v1349_v12  ;;  %v1152_v48 = vpop.f32.mrb[14].mxu1 }
 0x3de   : > { %888 = vst.msk [vmem:[%s252_s28 + $0x28] sm:$0xff] %vm272_vm0, %v880_v7  ;;  %v874_v49 = vmul.f32 %v1152_v48, %v866_v31  ;;  %v856_v50 = vpop.f32.mrb[15].mxu1 }
 0x3df   : > { %887 = vst.msk [vmem:[%s252_s28 + $0x20] sm:$0xff] %vm272_vm0, %v879_v47  ;;  %v873_v10 = vmul.f32 %v866_v31, %v856_v50 }
 0x3e0   : > { %v882_v11 = vadd.f32 %v874_v49, %v1369_v16 }
 0x3e1   : > { %v881_v51 = vadd.f32 %v873_v10, %v1359_v15 }
 0x3e2   : > { %890 = vst.msk [vmem:[%s252_s28 + $0x38] sm:$0xff] %vm272_vm0, %v882_v11 }
 0x3e3   : > { %889 = vst.msk [vmem:[%s252_s28 + $0x30] sm:$0xff] %vm272_vm0, %v881_v51 }
 0x3e4 PF: > { %s17_s23 = sadd.s32 1, %s1255_s23  }
 0x3e5   : > { %p14_p4 = scmp.ge.s32.totalorder %s17_s23, 4  }
 0x3e7   :  { %16 = sbr.rel (!%p14_p4) target bundleno = 2 (0x2), region = 74 }

</bundles_post_ra>
